<compile_context>
chip_gen: v7x
topology: tpu7x:2x2x1
jax: 0.10.0
libtpu: 0.0.40
codegen_flags: <defaults>
</compile_context>

<pallas_src>
import functools

import jax
import jax.numpy as jnp
from jax.experimental import pallas as pl
from jax.experimental.pallas import tpu as pltpu

IN_FEATURES = 128 * 3   # 384
NUM_CLASSES = 2
TILE_B = 4096           # default batch tile (f32 x: ~16 MiB total VMEM, bf16: ~10 MiB)
VMEM_LIMIT = 48 * 1024 * 1024   # <= v7x 64 MiB physical; v5e/v6e have 128 MiB


def _round_up(n, m):
    return ((n + m - 1) // m) * m


def _choose_tile(B, tile_b):
    # Aim for >=2 grid steps when possible so v7x's two TensorCores both get work
    # (batch axis is "parallel"); round to 16 rows (bf16 min sublane tile).
    tb = min(tile_b, max(pl.cdiv(B, 2), 1))
    return max(16, _round_up(tb, 16))


# ---------------------------------------------------------------------------
# Kernels
# ---------------------------------------------------------------------------
def _linear_cls1_kernel(x_ref, w1_ref, b1_ref, o_ref):
    """Inference path (labels is None): only the class-1 logit is needed."""
    o_ref[...] = (
        jnp.dot(x_ref[...], w1_ref[...], preferred_element_type=jnp.float32)
        + b1_ref[...]
    )


def _losscomb_kernel(x_ref, wd_ref, bd_ref, lab_ref, softmax_ref, part_ref,
                     *, true_b, tile_b):
    """Training path for one batch tile.

    x_ref       : (TB, 384)   activations (f32 or bf16)
    wd_ref      : (384, 1)    w[:,1] - w[:,0]   (same dtype as x)
    bd_ref      : (1, 1)      b[1] - b[0]       (f32)
    lab_ref     : (1, 1, TB)  labels, lane-dense, zero beyond the true batch
    softmax_ref : (TB, 2)     softmax(logits) = [sigmoid(-d), sigmoid(d)]
    part_ref    : (8, 2)      row-broadcast [sum per-sample CE, correct count]
    """
    x = x_ref[...]                                                    # (TB, D)
    d = (jnp.dot(x, wd_ref[...], preferred_element_type=jnp.float32)
         + bd_ref[...])                                               # (TB, 1)

    # Exact 2-class softmax from the logit difference (no approx reciprocal).
    sm1 = 1.0 / (1.0 + jnp.exp(-d))
    sm0 = 1.0 / (1.0 + jnp.exp(d))
    softmax_ref[...] = jnp.concatenate([sm0, sm1], axis=1)

    # Numerically stable softplus(d) = max(d,0) + log(1 + exp(-|d|)).
    sp = jnp.maximum(d, 0.0) + jnp.log(1.0 + jnp.exp(-jnp.abs(d)))
    pred = jnp.round(sm1)                                             # {0,1}

    # Mask padded rows (NaN-safe: where(), not multiply).
    row = (pl.program_id(0) * tile_b
           + jax.lax.broadcasted_iota(jnp.int32, (tile_b, 1), 0))
    valid = row < true_b
    vf = valid.astype(jnp.float32)
    d_v = jnp.where(valid, d, 0.0)
    sp_v = jnp.where(valid, sp, 0.0)
    pred_v = jnp.where(valid, pred, 0.0)

    # Labels are lane-dense (1, TB); they only enter through MXU dot products:
    #   sum(label*d)    -> CE term      (CE_i = softplus(d_i) - label_i * d_i)
    #   sum(label*pred) -> correct count
    lab = lab_ref[0]                                                  # (1, TB)
    stacked = jnp.concatenate([d_v, pred_v], axis=1)                  # (TB, 2)
    dots = jnp.dot(lab, stacked, preferred_element_type=jnp.float32)  # (1, 2)
    lab_d = dots[:, 0:1]
    lab_p = dots[:, 1:2]

    n_valid = jnp.sum(vf, axis=0, keepdims=True)                      # (1, 1)
    sp_sum = jnp.sum(sp_v, axis=0, keepdims=True)
    pred_sum = jnp.sum(pred_v, axis=0, keepdims=True)
    lab_sum = jnp.sum(lab, axis=1, keepdims=True)                     # (1, 1)

    loss_part = sp_sum - lab_d                                        # sum CE
    # sum(pred == label) = N - sum(pred) - sum(label) + 2*sum(pred*label)
    corr_part = n_valid - pred_sum - lab_sum + 2.0 * lab_p

    row0 = jnp.concatenate([loss_part, corr_part], axis=1)            # (1, 2)
    part_ref[...] = jnp.broadcast_to(row0, (8, NUM_CLASSES))


# ---------------------------------------------------------------------------
# Wrapper (equivalent of lossComb.forward)
# ---------------------------------------------------------------------------
@functools.partial(jax.jit, static_argnames=("with_labels", "tile_b"))
def loss_comb_forward(x, wT, b, labels=None, *, with_labels=True,
                      tile_b=TILE_B):
    """x: (B, 1, 384) f32 or bf16 (feed bf16 from the producer for ~2x HBM BW),
    wT: (384, 2) f32, b: (2,) f32, labels: (B,) int or None."""
    x2 = jnp.squeeze(x, axis=1)                  # (B, D); keep producer dtype
    B, D = x2.shape
    TB = _choose_tile(B, tile_b)
    num_tiles = pl.cdiv(B, TB)
    B_pad = num_tiles * TB
    if B_pad != B:
        # Perf note: prefer TB | B (or fuse padding upstream) to avoid this
        # extra pass over x; the in-kernel where()-mask keeps it correct.
        x2 = jnp.pad(x2, ((0, B_pad - B), (0, 0)))

    cparams = pltpu.CompilerParams(
        dimension_semantics=("parallel",),       # megacore shard on v7x
        vmem_limit_bytes=VMEM_LIMIT)
    bytes_x = B_pad * D * x2.dtype.itemsize

    if not with_labels:
        # predScore = logits[:, 1] -> compute only the class-1 logit column.
        w1 = wT[:, 1:2].astype(x2.dtype)                              # (D, 1)
        b1 = b[1].reshape(1, 1).astype(jnp.float32)                   # (1, 1)
        cost = pl.CostEstimate(flops=2 * B_pad * D, transcendentals=0,
                               bytes_accessed=bytes_x + B_pad * 4)
        logits1 = pl.pallas_call(
            _linear_cls1_kernel,
            out_shape=jax.ShapeDtypeStruct((B_pad, 1), jnp.float32),
            grid=(num_tiles,),
            in_specs=[pl.BlockSpec((TB, D), lambda i: (i, 0)),
                      pl.BlockSpec((D, 1), lambda i: (0, 0)),
                      pl.BlockSpec((1, 1), lambda i: (0, 0))],
            out_specs=pl.BlockSpec((TB, 1), lambda i: (i, 0)),
            compiler_params=cparams,
            cost_estimate=cost,
        )(x2, w1, b1)
        return logits1[:B, 0]

    # Lane-dense labels: (num_tiles, 1, TB) f32, zero-padded beyond B.
    labels_f = labels.astype(jnp.float32)
    if B_pad != B:
        labels_f = jnp.pad(labels_f, (0, B_pad - B))
    labels_lane = labels_f.reshape(num_tiles, 1, TB)

    wd = (wT[:, 1:2] - wT[:, 0:1]).astype(x2.dtype)                   # (D, 1)
    bd = (b[1] - b[0]).reshape(1, 1).astype(jnp.float32)              # (1, 1)

    kernel = functools.partial(_losscomb_kernel, true_b=B, tile_b=TB)
    cost = pl.CostEstimate(
        flops=2 * B_pad * D + 8 * B_pad,
        transcendentals=3 * B_pad,
        bytes_accessed=bytes_x + B_pad * 4 + B_pad * NUM_CLASSES * 4)

    softmax_pad, partials = pl.pallas_call(
        kernel,
        out_shape=(
            jax.ShapeDtypeStruct((B_pad, NUM_CLASSES), jnp.float32),  # softmax
            jax.ShapeDtypeStruct((num_tiles * 8, 2), jnp.float32),    # partials
        ),
        grid=(num_tiles,),
        in_specs=[pl.BlockSpec((TB, D), lambda i: (i, 0)),
                  pl.BlockSpec((D, 1), lambda i: (0, 0)),
                  pl.BlockSpec((1, 1), lambda i: (0, 0)),
                  pl.BlockSpec((1, 1, TB), lambda i: (i, 0, 0))],
        out_specs=(pl.BlockSpec((TB, NUM_CLASSES), lambda i: (i, 0)),
                   pl.BlockSpec((8, 2), lambda i: (i, 0))),
        compiler_params=cparams,
        cost_estimate=cost,
    )(x2, wd, bd, labels_lane)

    softmax = softmax_pad[:B]                                         # (B, 2)
    part_rows = partials.reshape(num_tiles, 8, 2)[:, 0, :]            # (nt, 2)
    nloss = jnp.sum(part_rows[:, 0]) / jnp.float32(B)                 # mean CE
    correctNum = jnp.sum(part_rows[:, 1])
    predLabel = jnp.round(softmax[:, 1])
    return nloss, softmax, predLabel, correctNum


# ---------------------------------------------------------------------------
# Deterministic parameter init (mimics nn.Linear default U(-1/sqrt(fan_in), ..))
# ---------------------------------------------------------------------------
def init_params(key):
    kw, kb = jax.random.split(key)
    bound = 1.0 / jnp.sqrt(jnp.float32(IN_FEATURES))
    W = jax.random.uniform(kw, (NUM_CLASSES, IN_FEATURES), jnp.float32,
                           minval=-bound, maxval=bound)
    b = jax.random.uniform(kb, (NUM_CLASSES,), jnp.float32,
                           minval=-bound, maxval=bound)
    return W.T, b   # pass W^T so the kernel does x @ W^T directly


def _reference(x, wT, b, labels):
    x2 = jnp.squeeze(x, axis=1).astype(jnp.float32)
    logits = x2 @ wT + b
    sm = jax.nn.softmax(logits, axis=-1)
    loss = -jnp.mean(jnp.take_along_axis(jax.nn.log_softmax(logits, -1),
                                         labels[:, None], axis=1))
    correct = jnp.sum(jnp.round(sm[:, 1]) == labels.astype(jnp.float32))
    return logits, sm, loss, correct


if __name__ == "__main__":
    key = jax.random.PRNGKey(0)
    k_x, k_l, k_p = jax.random.split(key, 3)

    B = 8
    x = jax.random.normal(k_x, (B, 1, IN_FEATURES), jnp.float32)
    labels = jax.random.randint(k_l, (B,), 0, NUM_CLASSES, jnp.int32)
    wT, b = init_params(k_p)

    logits_ref, sm_ref, loss_ref, correct_ref = _reference(x, wT, b, labels)

    # --- training path (labels provided), f32 x -----------------------------
    nloss, predScore, predLabel, correctNum = loss_comb_forward(
        x, wT, b, labels, with_labels=True)
    jax.block_until_ready((nloss, predScore, predLabel, correctNum))
    assert jnp.allclose(predScore, sm_ref, atol=1e-4)
    assert jnp.allclose(nloss, loss_ref, atol=1e-4)
    assert jnp.allclose(correctNum, correct_ref)

    # --- inference path (labels None) ---------------------------------------
    pred_only = loss_comb_forward(x, wT, b, with_labels=False)
    jax.block_until_ready(pred_only)
    assert jnp.allclose(pred_only, logits_ref[:, 1], atol=1e-4)

    # --- bf16 activation path (as produced upstream): ~2x HBM bandwidth -----
    x_bf16 = x.astype(jnp.bfloat16)
    nloss_h, sm_h, pl_h, cn_h = loss_comb_forward(
        x_bf16, wT, b, labels, with_labels=True)
    jax.block_until_ready((nloss_h, sm_h, pl_h, cn_h))
    assert jnp.allclose(sm_h, sm_ref, atol=3e-2)
    assert jnp.allclose(nloss_h, loss_ref, atol=3e-2)

    # --- multi-tile + padding path (B not a multiple of the tile) -----------
    B2 = 20
    x_b = jax.random.normal(jax.random.PRNGKey(1), (B2, 1, IN_FEATURES),
                            jnp.float32)
    labels_b = jax.random.randint(jax.random.PRNGKey(2), (B2,), 0,
                                  NUM_CLASSES, jnp.int32)
    nloss_b, sm_b, pl_b, cn_b = loss_comb_forward(
        x_b, wT, b, labels_b, with_labels=True, tile_b=8)
    jax.block_until_ready((nloss_b, sm_b, pl_b, cn_b))
    _, sm_ref_b, loss_ref_b, correct_ref_b = _reference(x_b, wT, b, labels_b)
    assert jnp.allclose(sm_b, sm_ref_b, atol=1e-4)
    assert jnp.allclose(nloss_b, loss_ref_b, atol=1e-4)
    assert jnp.allclose(cn_b, correct_ref_b)

    print("KERNEL_OK")
</pallas_src>

<mosaic_0001>
module attributes {stable_mosaic.version = 11 : i64} {
  func.func @_losscomb_kernel(%arg0: i32, %arg1: memref<16x384xf32, #tpu.memory_space<vmem>>, %arg2: memref<384x1xf32, #tpu.memory_space<vmem>>, %arg3: memref<1x1xf32, #tpu.memory_space<vmem>>, %arg4: memref<1x1x16xf32, #tpu.memory_space<vmem>>, %arg5: memref<16x2xf32, #tpu.memory_space<vmem>>, %arg6: memref<8x2xf32, #tpu.memory_space<vmem>>) attributes {dimension_semantics = [#tpu.dimension_semantics<parallel>], iteration_bounds = array<i64: 1>, scalar_prefetch = 0 : i64, scratch_operands = 0 : i64, tpu.core_type = #tpu.core_type<tc>, window_params = [{transform_indices = @transform_0, window_bounds = array<i64: 16, 384>}, {pipeline_mode = #tpu.pipeline_mode<synchronous>, transform_indices = @transform_1, window_bounds = array<i64: 384, 1>}, {pipeline_mode = #tpu.pipeline_mode<synchronous>, transform_indices = @transform_2, window_bounds = array<i64: 1, 1>}, {transform_indices = @transform_3, window_bounds = array<i64: 1, 1, 16>}, {transform_indices = @transform_4, window_bounds = array<i64: 16, 2>}, {transform_indices = @transform_5, window_bounds = array<i64: 8, 2>}]} {
    %c0 = arith.constant 0 : index
    %c0_0 = arith.constant 0 : index
    %0 = vector.load %arg1[%c0, %c0_0] : memref<16x384xf32, #tpu.memory_space<vmem>>, vector<16x384xf32>
    %c0_1 = arith.constant 0 : index
    %c0_2 = arith.constant 0 : index
    %1 = vector.load %arg2[%c0_1, %c0_2] : memref<384x1xf32, #tpu.memory_space<vmem>>, vector<384x1xf32>
    %cst = arith.constant dense<0.000000e+00> : vector<16x1xf32>
    %2 = tpu.matmul %0, %1, %cst {dimension_numbers = #tpu.dot_dimension_numbers<[1], [0], [0], [1], [0, 0, 1, 1], [], []>} : vector<16x384xf32>, vector<384x1xf32>, vector<16x1xf32> -> vector<16x1xf32>
    %c0_3 = arith.constant 0 : index
    %c0_4 = arith.constant 0 : index
    %3 = vector.load %arg3[%c0_3, %c0_4] : memref<1x1xf32, #tpu.memory_space<vmem>>, vector<1x1xf32>
    %4 = vector.broadcast %3 : vector<1x1xf32> to vector<16x1xf32>
    %5 = arith.addf %2, %4 : vector<16x1xf32>
    %cst_5 = arith.constant 0.000000e+00 : f32
    %6 = vector.broadcast %cst_5 : f32 to vector<16x1xf32>
    %7 = arith.subf %6, %5 : vector<16x1xf32>
    %8 = math.exp %7 : vector<16x1xf32>
    %cst_6 = arith.constant 1.000000e+00 : f32
    %9 = vector.broadcast %cst_6 : f32 to vector<16x1xf32>
    %10 = arith.addf %9, %8 : vector<16x1xf32>
    %cst_7 = arith.constant 1.000000e+00 : f32
    %11 = vector.broadcast %cst_7 : f32 to vector<16x1xf32>
    %12 = arith.divf %11, %10 : vector<16x1xf32>
    %13 = math.exp %5 : vector<16x1xf32>
    %cst_8 = arith.constant 1.000000e+00 : f32
    %14 = vector.broadcast %cst_8 : f32 to vector<16x1xf32>
    %15 = arith.addf %14, %13 : vector<16x1xf32>
    %cst_9 = arith.constant 1.000000e+00 : f32
    %16 = vector.broadcast %cst_9 : f32 to vector<16x1xf32>
    %17 = arith.divf %16, %15 : vector<16x1xf32>
    %18 = tpu.concatenate %17, %12 in 1 : vector<16x1xf32>, vector<16x1xf32> -> vector<16x2xf32>
    %c0_10 = arith.constant 0 : index
    %c0_11 = arith.constant 0 : index
    %19 = vector.load %arg5[%c0_10, %c0_11] : memref<16x2xf32, #tpu.memory_space<vmem>>, vector<16x2xf32>
    tpu.vector_store %arg5[%c0_10, %c0_11], %18 {strides = array<i32>} : memref<16x2xf32, #tpu.memory_space<vmem>>, vector<16x2xf32>,
    %cst_12 = arith.constant 0.000000e+00 : f32
    %20 = vector.broadcast %cst_12 : f32 to vector<16x1xf32>
    %21 = arith.maximumf %5, %20 : vector<16x1xf32>
    %22 = math.absf %5 : vector<16x1xf32>
    %cst_13 = arith.constant 0.000000e+00 : f32
    %23 = vector.broadcast %cst_13 : f32 to vector<16x1xf32>
    %24 = arith.subf %23, %22 : vector<16x1xf32>
    %25 = math.exp %24 : vector<16x1xf32>
    %cst_14 = arith.constant 1.000000e+00 : f32
    %26 = vector.broadcast %cst_14 : f32 to vector<16x1xf32>
    %27 = arith.addf %26, %25 : vector<16x1xf32>
    %28 = math.log %27 : vector<16x1xf32>
    %29 = arith.addf %21, %28 : vector<16x1xf32>
    %30 = math.roundeven %12 : vector<16x1xf32>
    %c16_i32 = arith.constant 16 : i32
    %31 = arith.muli %arg0, %c16_i32 : i32
    %32 = tpu.iota {dimensions = array<i32: 0>} : vector<16x1xi32>
    %33 = vector.broadcast %31 : i32 to vector<16x1xi32>
    %34 = arith.addi %33, %32 : vector<16x1xi32>
    %c8_i32 = arith.constant 8 : i32
    %35 = vector.broadcast %c8_i32 : i32 to vector<16x1xi32>
    %36 = arith.cmpi slt, %34, %35 : vector<16x1xi32>
    %37 = arith.extui %36 : vector<16x1xi1> to vector<16x1xi32>
    %38 = arith.sitofp %37 : vector<16x1xi32> to vector<16x1xf32>
    %cst_15 = arith.constant 0.000000e+00 : f32
    %39 = vector.broadcast %cst_15 : f32 to vector<16x1xf32>
    %40 = arith.select %36, %5, %39 : vector<16x1xi1>, vector<16x1xf32>
    %cst_16 = arith.constant 0.000000e+00 : f32
    %41 = vector.broadcast %cst_16 : f32 to vector<16x1xf32>
    %42 = arith.select %36, %29, %41 : vector<16x1xi1>, vector<16x1xf32>
    %cst_17 = arith.constant 0.000000e+00 : f32
    %43 = vector.broadcast %cst_17 : f32 to vector<16x1xf32>
    %44 = arith.select %36, %30, %43 : vector<16x1xi1>, vector<16x1xf32>
    %c0_18 = arith.constant 0 : index
    %c0_19 = arith.constant 0 : index
    %c0_20 = arith.constant 0 : index
    %45 = vector.load %arg4[%c0_18, %c0_19, %c0_20] : memref<1x1x16xf32, #tpu.memory_space<vmem>>, vector<1x1x16xf32>
    %46 = vector.shape_cast %45 : vector<1x1x16xf32> to vector<1x16xf32>
    %47 = tpu.concatenate %40, %44 in 1 : vector<16x1xf32>, vector<16x1xf32> -> vector<16x2xf32>
    %cst_21 = arith.constant dense<0.000000e+00> : vector<1x2xf32>
    %48 = tpu.matmul %46, %47, %cst_21 {dimension_numbers = #tpu.dot_dimension_numbers<[1], [0], [0], [1], [0, 0, 1, 1], [], []>} : vector<1x16xf32>, vector<16x2xf32>, vector<1x2xf32> -> vector<1x2xf32>
    %49 = vector.extract_strided_slice %48 {offsets = [0, 0], sizes = [1, 1], strides = [1, 1]} : vector<1x2xf32> to vector<1x1xf32>
    %50 = vector.extract_strided_slice %48 {offsets = [0, 1], sizes = [1, 1], strides = [1, 1]} : vector<1x2xf32> to vector<1x1xf32>
    %cst_22 = arith.constant dense<0.000000e+00> : vector<1xf32>
    %51 = vector.multi_reduction <add>, %38, %cst_22 [0] : vector<16x1xf32> to vector<1xf32>
    %52 = vector.shape_cast %51 : vector<1xf32> to vector<1x1xf32>
    %cst_23 = arith.constant dense<0.000000e+00> : vector<1xf32>
    %53 = vector.multi_reduction <add>, %42, %cst_23 [0] : vector<16x1xf32> to vector<1xf32>
    %54 = vector.shape_cast %53 : vector<1xf32> to vector<1x1xf32>
    %cst_24 = arith.constant dense<0.000000e+00> : vector<1xf32>
    %55 = vector.multi_reduction <add>, %44, %cst_24 [0] : vector<16x1xf32> to vector<1xf32>
    %56 = vector.shape_cast %55 : vector<1xf32> to vector<1x1xf32>
    %cst_25 = arith.constant dense<0.000000e+00> : vector<1xf32>
    %57 = vector.multi_reduction <add>, %46, %cst_25 [1] : vector<1x16xf32> to vector<1xf32>
    %58 = vector.shape_cast %57 : vector<1xf32> to vector<1x1xf32>
    %59 = arith.subf %54, %49 : vector<1x1xf32>
    %60 = arith.subf %52, %56 : vector<1x1xf32>
    %61 = arith.subf %60, %58 : vector<1x1xf32>
    %cst_26 = arith.constant 2.000000e+00 : f32
    %62 = vector.broadcast %cst_26 : f32 to vector<1x1xf32>
    %63 = arith.mulf %62, %50 : vector<1x1xf32>
    %64 = arith.addf %61, %63 : vector<1x1xf32>
    %65 = tpu.concatenate %59, %64 in 1 : vector<1x1xf32>, vector<1x1xf32> -> vector<1x2xf32>
    %66 = vector.shape_cast %65 : vector<1x2xf32> to vector<1x2xf32>
    %67 = vector.broadcast %66 : vector<1x2xf32> to vector<8x2xf32>
    %c0_27 = arith.constant 0 : index
    %c0_28 = arith.constant 0 : index
    %68 = vector.load %arg6[%c0_27, %c0_28] : memref<8x2xf32, #tpu.memory_space<vmem>>, vector<8x2xf32>
    tpu.vector_store %arg6[%c0_27, %c0_28], %67 {strides = array<i32>} : memref<8x2xf32, #tpu.memory_space<vmem>>, vector<8x2xf32>,
    return
  }
  func.func @transform_0(%arg0: i32) -> (i32, i32) {
    %c0_i32 = arith.constant 0 : i32
    %c0_i32_0 = arith.constant 0 : i32
    return %arg0, %c0_i32 : i32, i32
  }
  func.func @transform_1(%arg0: i32) -> (i32, i32) {
    %c0_i32 = arith.constant 0 : i32
    %c0_i32_0 = arith.constant 0 : i32
    %c0_i32_1 = arith.constant 0 : i32
    return %c0_i32, %c0_i32_0 : i32, i32
  }
  func.func @transform_2(%arg0: i32) -> (i32, i32) {
    %c0_i32 = arith.constant 0 : i32
    %c0_i32_0 = arith.constant 0 : i32
    %c0_i32_1 = arith.constant 0 : i32
    return %c0_i32, %c0_i32_0 : i32, i32
  }
  func.func @transform_3(%arg0: i32) -> (i32, i32, i32) {
    %c0_i32 = arith.constant 0 : i32
    %c0_i32_0 = arith.constant 0 : i32
    %c0_i32_1 = arith.constant 0 : i32
    return %arg0, %c0_i32, %c0_i32_0 : i32, i32, i32
  }
  func.func @transform_4(%arg0: i32) -> (i32, i32) {
    %c0_i32 = arith.constant 0 : i32
    %c0_i32_0 = arith.constant 0 : i32
    return %arg0, %c0_i32 : i32, i32
  }
  func.func @transform_5(%arg0: i32) -> (i32, i32) {
    %c0_i32 = arith.constant 0 : i32
    %c0_i32_0 = arith.constant 0 : i32
    return %arg0, %c0_i32 : i32, i32
  }
}

</mosaic_0001>

<bundles_post_ra>
// kernel: loss_comb_forward.1
= control target key start
LH: loop header
LB: loop body
LE: loop exit
PB: predicated region body
PF: predicated region fallthrough
CT: control target
= control target key end

     0   :  { %vm655_vm0 = vmmov 0   ;;  %vm417_vm1 = vcmask 122880   ;;  %vm262_vm2 = vcmask 7168   ;;  %vm658_vm4 = vmmov 1   ;;  %s897_s1 = inlined_call_operand.vmem [shape: f32[384,1], index: 1, kind: input, shape index: {}]   ;;  %s898_s0 = inlined_call_operand.vmem [shape: f32[16,384], index: 0, kind: input, shape index: {}]   ;;  %s899_s2 = inlined_call_operand.<no memory space> [shape: f32[1,1], index: 2, kind: input, shape index: {}]   ;;  %s900_s3 = inlined_call_operand.vmem [shape: f32[1,1,16], index: 3, kind: input, shape index: {}]   ;;  %s901_s4 = inlined_call_operand.vmem [shape: f32[16,2], index: 4, kind: output, shape index: {0}]   ;;  %s902_s5 = inlined_call_operand.vmem [shape: f32[8,2], index: 5, kind: output, shape index: {1}]  }
   0x1   :  { %v43_v0 = vld [vmem:[%s897_s1 + $0x80] sm:$0xff]  ;;  %v44_v1 = vld [vmem:[%s897_s1 + $0x88] sm:$0xff]  ;;  %v45_v9 = vld [vmem:[%s897_s1 + $0x90] sm:$0xff]  ;;  %vm318_vm6 = vcmask 130048   ;;  %vm265_vm7 = vcmask 15360  }
   0x2   :  { %v27_v2 = vld [vmem:[%s897_s1] sm:$0xff]  ;;  %v553_v3 = vpack.c.bf16 %v44_v1, %v43_v0  ;;  %v28_v4 = vld [vmem:[%s897_s1 + $0x8] sm:$0xff]  ;;  %v46_v10 = vld [vmem:[%s897_s1 + $0x98] sm:$0xff] }
   0x3   :  { %v59_v5 = vld [vmem:[%s897_s1 + $0x100] sm:$0xff]  ;;  %v60_v6 = vld [vmem:[%s897_s1 + $0x108] sm:$0xff]  ;;  %v555_v7 = vpack.c.bf16 %v28_v4, %v27_v2  ;;  %v29_v11 = vld [vmem:[%s897_s1 + $0x10] sm:$0xff]  ;;  %v557_v12 = vpack.c.bf16 %v46_v10, %v45_v9 }
   0x4   :  { %v585_v8 = vpack.c.bf16 %v60_v6, %v59_v5  ;;  %554 = vmatprep.subr.bf16.mxu0 %v553_v3  ;;  %v30_v13 = vld [vmem:[%s897_s1 + $0x18] sm:$0xff]  ;;  %v61_v14 = vld [vmem:[%s897_s1 + $0x110] sm:$0xff]  ;;  %v47_v18 = vld [vmem:[%s897_s1 + $0xa0] sm:$0xff] }
   0x5   :  { %v62_v15 = vld [vmem:[%s897_s1 + $0x118] sm:$0xff]  ;;  %556 = vmatpush3.bf16.msra.mxu0 %v555_v7  ;;  %v559_v16 = vpack.c.bf16 %v30_v13, %v29_v11  ;;  %v48_v19 = vld [vmem:[%s897_s1 + $0xa8] sm:$0xff]  ;;  %v31_v20 = vld [vmem:[%s897_s1 + $0x20] sm:$0xff] }
   0x6   :  { %586 = vmatprep.subr.bf16.mxu1 %v585_v8  ;;  %v589_v17 = vpack.c.bf16 %v62_v15, %v61_v14  ;;  %558 = vmatprep.subr.bf16.mxu0 %v557_v12  ;;  %v561_v21 = vpack.c.bf16 %v48_v19, %v47_v18  ;;  %v32_v22 = vld [vmem:[%s897_s1 + $0x28] sm:$0xff]  ;;  %v63_v23 = vld [vmem:[%s897_s1 + $0x120] sm:$0xff]  ;;  %v49_v26 = vld [vmem:[%s897_s1 + $0xb0] sm:$0xff]  ;;  %v11_v14 = vstv %s899_s2 }
   0x7   :  { %588 = vmatpush3.bf16.msra.mxu1 %v585_v8  ;;  %v64_v24 = vld [vmem:[%s897_s1 + $0x128] sm:$0xff]  ;;  %v50_v27 = vld [vmem:[%s897_s1 + $0xb8] sm:$0xff]  ;;  %v65_v28 = vld [vmem:[%s897_s1 + $0x130] sm:$0xff]  ;;  %v563_v30 = vpack.c.bf16 %v32_v22, %v31_v20  ;;  %12 = vst [vmem:[#allocation2] sm:$0x1] %v11_v14 }
   0x8   :  { %590 = vmatprep.subr.bf16.mxu1 %v589_v17  ;;  %v593_v25 = vpack.c.bf16 %v64_v24, %v63_v23  ;;  %v66_v29 = vld [vmem:[%s897_s1 + $0x138] sm:$0xff]  ;;  %v565_v31 = vpack.c.bf16 %v50_v27, %v49_v26  ;;  %v33_v32 = vld [vmem:[%s897_s1 + $0x30] sm:$0xff]  ;;  %v51_v35 = vld [vmem:[%s897_s1 + $0xc0] sm:$0xff] }
   0x9   :  { %560 = vmatpush3.bf16.msra.mxu0 %v559_v16  ;;  %v34_v33 = vld [vmem:[%s897_s1 + $0x38] sm:$0xff]  ;;  %v597_v34 = vpack.c.bf16 %v66_v29, %v65_v28  ;;  %v52_v36 = vld [vmem:[%s897_s1 + $0xc8] sm:$0xff]  ;;  %v67_v37 = vld [vmem:[%s897_s1 + $0x140] sm:$0xff] }
   0xa   :  { %562 = vmatprep.subr.bf16.mxu0 %v561_v21  ;;  %v68_v38 = vld [vmem:[%s897_s1 + $0x148] sm:$0xff]  ;;  %v567_v39 = vpack.c.bf16 %v34_v33, %v33_v32  ;;  %v569_v40 = vpack.c.bf16 %v52_v36, %v51_v35  ;;  %v35_v41 = vld [vmem:[%s897_s1 + $0x40] sm:$0xff]  ;;  %v53_v44 = vld [vmem:[%s897_s1 + $0xd0] sm:$0xff]  ;;  %v654_v32 = vmov 0.0|0.0   ;;  %v656_v33 = vmov 0.0  }
   0xb   :  { %592 = vmatpush3.bf16.msra.mxu1 %v589_v17  ;;  %v36_v42 = vld [vmem:[%s897_s1 + $0x48] sm:$0xff]  ;;  %v601_v43 = vpack.c.bf16 %v68_v38, %v67_v37  ;;  %v54_v45 = vld [vmem:[%s897_s1 + $0xd8] sm:$0xff]  ;;  %v69_v46 = vld [vmem:[%s897_s1 + $0x150] sm:$0xff] }
   0xc   :  { %594 = vmatprep.subr.bf16.mxu1 %v593_v25  ;;  %v70_v47 = vld [vmem:[%s897_s1 + $0x158] sm:$0xff]  ;;  %v22_v48 = vld [vmem:[%s898_s0 + $0x8] sm:$0xff]  ;;  %v571_v49 = vpack.c.bf16 %v36_v42, %v35_v41  ;;  %v23_v50 = vld [vmem:[%s898_s0 + $0x10] sm:$0xff]  ;;  %v573_v51 = vpack.c.bf16 %v54_v45, %v53_v44 }
   0xd   :  { %564 = vmatpush3.bf16.msra.mxu0 %v563_v30  ;;  %146 = vmatprep.mubr.f32.mxu0 %v22_v48  ;;  %v37_v52 = vld [vmem:[%s897_s1 + $0x50] sm:$0xff]  ;;  %v38_v53 = vld [vmem:[%s897_s1 + $0x58] sm:$0xff]  ;;  %v605_v54 = vpack.c.bf16 %v70_v47, %v69_v46  ;;  %v55_v55 = vld [vmem:[%s897_s1 + $0xe0] sm:$0xff] }
   0xe   :  { %566 = vmatprep.subr.bf16.mxu0 %v565_v31  ;;  %v56_v56 = vld [vmem:[%s897_s1 + $0xe8] sm:$0xff]  ;;  %543 = vmatprep.mubr.f32.mxu1 %v23_v50  ;;  %v71_v57 = vld [vmem:[%s897_s1 + $0x160] sm:$0xff]  ;;  %v575_v59 = vpack.c.bf16 %v38_v53, %v37_v52  ;;  %v57_v0 = vld [vmem:[%s897_s1 + $0xf0] sm:$0xff] }
   0xf   :  { %596 = vmatpush3.bf16.msra.mxu1 %v593_v25  ;;  %v72_v58 = vld [vmem:[%s897_s1 + $0x168] sm:$0xff]  ;;  %v577_v60 = vpack.c.bf16 %v56_v56, %v55_v55  ;;  %v39_v61 = vld [vmem:[%s897_s1 + $0x60] sm:$0xff]  ;;  %v58_v1 = vld [vmem:[%s897_s1 + $0xf8] sm:$0xff] }
  0x10   :  { %598 = vmatprep.subr.bf16.mxu1 %v597_v34  ;;  %v40_v62 = vld [vmem:[%s897_s1 + $0x68] sm:$0xff]  ;;  %v609_v63 = vpack.c.bf16 %v72_v58, %v71_v57  ;;  %v73_v2 = vld [vmem:[%s897_s1 + $0x170] sm:$0xff]  ;;  %v74_v3 = vld [vmem:[%s897_s1 + $0x178] sm:$0xff]  ;;  %v581_v5 = vpack.c.bf16 %v58_v1, %v57_v0 }
  0x11   :  { %568 = vmatpush3.bf16.msra.mxu0 %v567_v39  ;;  %v579_v4 = vpack.c.bf16 %v40_v62, %v39_v61  ;;  %v41_v6 = vld [vmem:[%s897_s1 + $0x70] sm:$0xff]  ;;  %v42_v7 = vld [vmem:[%s897_s1 + $0x78] sm:$0xff]  ;;  %v613_v8 = vpack.c.bf16 %v74_v3, %v73_v2  ;;  %v21_v10 = vld [vmem:[%s898_s0] sm:$0xff] }
  0x12   :  { %570 = vmatprep.subr.bf16.mxu0 %v569_v40  ;;  %v583_v9 = vpack.c.bf16 %v42_v7, %v41_v6  ;;  %v25_v11 = vld [vmem:[%s898_s0 + $0x20] sm:$0xff]  ;;  %v26_v12 = vld [vmem:[%s898_s0 + $0x28] sm:$0xff]  ;;  %v24_v13 = vld [vmem:[%s898_s0 + $0x18] sm:$0xff]  ;;  %s657_s0 = smov 1  }
  0x13   :  { %600 = vmatpush3.bf16.msra.mxu1 %v597_v34  ;;  %v448_v18 = vld [vmem:[#allocation2] ss:$0 sm:$0xff]  ;;  %vm449_vm3 = vmneg %vm262_vm2 }
  0x14   :  { %602 = vmatprep.subr.bf16.mxu1 %v601_v43  ;;  %v307_v37 = vld [vmem:[%s900_s3] sm:$0x1]  ;;  %vm619_vm5 = vmpackc.low %vm449_vm3, %vm658_vm4  ;;  %s659_s3 = smov 127  }
  0x15   :  { %572 = vmatpush3.bf16.msra.mxu0 %v571_v49  ;;  %v418_v38 = vsel %vm417_vm1, %v307_v37, 0.0 }
  0x16   :  { %574 = vmatprep.subr.bf16.mxu0 %v573_v51  ;;  %v660_v51 = vmov 1.0  }
  0x17   :  { %604 = vmatpush3.bf16.msra.mxu1 %v601_v43  ;;  %v393_v52 = vrot.slane %v660_v51, 4 }
  0x18   :  { %606 = vmatprep.subr.bf16.mxu1 %v605_v54 }
  0x19   :  { %576 = vmatpush3.bf16.msra.mxu0 %v575_v59  ;;  %v394_v55 = vadd.f32 1.0, %v393_v52 }
  0x1a   :  { %578 = vmatprep.subr.bf16.mxu0 %v577_v60 }
  0x1b   :  { %608 = vmatpush3.bf16.msra.mxu1 %v605_v54  ;;  %v395_v56 = vrot.slane %v394_v55, 2 }
  0x1c   :  { %610 = vmatprep.subr.bf16.mxu1 %v609_v63 }
  0x1d   :  { %580 = vmatpush3.bf16.msra.mxu0 %v579_v4  ;;  %v396_v58 = vadd.f32 %v395_v56, %v394_v55 }
  0x1e   :  { %582 = vmatprep.subr.bf16.mxu0 %v581_v5 }
  0x1f   :  { %612 = vmatpush3.bf16.msra.mxu1 %v609_v63  ;;  %v397_v62 = vrot.slane %v396_v58, 1 }
  0x20   :  { %614 = vmatprep.subr.bf16.mxu1 %v613_v8 }
  0x21   :  { %584 = vmatpush3.bf16.msra.mxu0 %v583_v9  ;;  %v398_v2 = vadd.f32 %v397_v62, %v396_v58 }
  0x23   :  { %616 = vmatpush3.bf16.msra.mxu1 %v613_v8 }
  0x24   :  { %147 = vmatmul.mubr.f32.vlgmr.msra.gmra.mrb[0].mxu0 %v21_v10  ;;  %617 = vmatprep.subr.bf16.mxu1 %v654_v32  ;;  %v435_v32 = vlaneseq }
  0x25   :  { %151 = vmatprep.mubr.f32.mxu0 %v25_v11 }
  0x26   :  { %544 = vmatmul.mubr.f32.vlgmr.msra.gmra.mrb[0].mxu1 %v26_v12 }
  0x27   :  { %550 = vmatprep.mubr.msk.f32.mxu1 %vm655_vm0, %v656_v33 }
  0x28   :  { %152 = vmatmul.mubr.f32.gmra.mrb[2].mxu0 %v24_v13 }
  0xf7   :  { %v484_v15 = vpop.f32.mrb[0].mxu0 }
  0xf8   :  { %v485_v16 = vpop.f32.mrb[1].mxu0 }
  0xf9   :  { %v545_v17 = vpop.f32.mrb[0].mxu1  ;;  %v486_v19 = vadd.f32 %v485_v16, %v484_v15 }
  0xfa   :  { %v223_v20 = vpop.f32.mrb[1].mxu1 }
  0xfb   :  { %v487_v21 = vpop.f32.mrb[2].mxu0  ;;  %v149_v22 = vadd.f32 %v486_v19, %v448_v18 }
  0xfc   :  { %v488_v23 = vpop.f32.mrb[3].mxu0 }
  0xfd   :  { %v856_v24 = vadd.f32 %v223_v20, %v149_v22  ;;  %v489_v25 = vadd.f32 %v488_v23, %v487_v21 }
  0xff   :  { %v232_v26 = vsub.f32 0.0, %v856_v24  ;;  %v154_v27 = vadd.f32 %v489_v25, %v448_v18  ;;  %v244_v49 = vmul.f32 1.442695, %v856_v24  ;;  %v270_v13 = vand.u32 2147483647, %v856_v24 }
 0x100   :  { %v268_v20 = vmax.f32 %v856_v24, 0.0 }
 0x101   :  { %v234_v28 = vmul.f32 1.442695, %v232_v26  ;;  %v859_v29 = vadd.f32 %v545_v17, %v154_v27  ;;  %v272_v14 = vsub.f32 0.0, %v270_v13 }
 0x103   :  { %634 = vpow2.f32 %v234_v28  ;;  %v233_v48 = vsub.f32 0.0, %v859_v29  ;;  %v274_v15 = vmul.f32 1.442695, %v272_v14  ;;  %v246_v22 = vmul.f32 1.442695, %v859_v29 }
 0x105   :  { %v236_v53 = vmul.f32 1.442695, %v233_v48 }
 0x10d   :  { %v635_v30 = vpop.eup %634 }
 0x10e   :  { %v238_v31 = vadd.f32 1.0, %v635_v30 }
 0x110   :  { %636 = vrcp.f32 %v238_v31 }
 0x111   :  { %638 = vpow2.f32 %v244_v49 }
 0x112   :  { %640 = vpow2.f32 %v236_v53 }
 0x11a   :  { %v637_v34 = vpop.eup %636 }
 0x11b   :  { %v621_v35 = vround.rtne.f32 %v637_v34  ;;  %v639_v60 = vpop.eup %638 }
 0x11c   :  { %v641_v61 = vpop.eup %640  ;;  %v248_v0 = vadd.f32 1.0, %v639_v60 }
 0x11d   :  { %v629_v36 = vpack.i.bf16 %v656_v33, %v621_v35  ;;  %v408_v47 = vsel %vm262_vm2, %v621_v35, 0.0  ;;  %v239_v1 = vadd.f32 1.0, %v641_v61 }
 0x11e   :  { %v411_v50 = vrot.slane %v408_v47, 4  ;;  %642 = vrcp.f32 %v248_v0 }
 0x11f   :  { %630 = vrot.lane.b32.xlu0 %v629_v36, %s657_s0  ;;  %644 = vrcp.f32 %v239_v1 }
 0x120   :  { %v412_v54 = vadd.f32 %v411_v50, %v408_v47  ;;  %646 = vpow2.f32 %v274_v15 }
 0x122   :  { %v413_v57 = vrot.slane %v412_v54, 2 }
 0x124   :  { %v414_v59 = vadd.f32 %v413_v57, %v412_v54 }
 0x126   :  { %v415_v63 = vrot.slane %v414_v59, 1 }
 0x128   :  { %v416_v3 = vadd.f32 %v415_v63, %v414_v59  ;;  %v643_v9 = vpop.eup %642 }
 0x129   :  { %v645_v12 = vpop.eup %644 }
 0x12a   :  { %v422_v5 = vsub.f32 %v398_v2, %v416_v3  ;;  %v647_v16 = vpop.eup %646 }
 0x12b   :  { %v278_v17 = vadd.f32 1.0, %v647_v16 }
 0x12d   :  { %648 = vlog2.f32 %v278_v17 }
 0x12e   :  { %650 = vpow2.f32 %v246_v22 }
 0x137   :  { %v649_v18 = vpop.eup %648 }
 0x138   :  { %v281_v19 = vmul.f32 0.6931472, %v649_v18  ;;  %v651_v28 = vpop.eup %650 }
 0x139   :  { %v249_v31 = vadd.f32 1.0, %v651_v28 }
 0x13a   :  { %v284_v21 = vadd.f32 %v281_v19, %v268_v20 }
 0x13b   :  { %652 = vrcp.f32 %v249_v31 }
 0x13c   :  { %v399_v23 = vsel %vm262_vm2, %v284_v21, 0.0 }
 0x13d   :  { %v402_v25 = vrot.slane %v399_v23, 4 }
 0x13e   :  { %419 = vadd.xlane.f32.xlu0 %v418_v38 }
 0x13f   :  { %v403_v26 = vadd.f32 %v402_v25, %v399_v23 }
 0x141   :  { %v404_v27 = vrot.slane %v403_v26, 2 }
 0x143   :  { %v405_v30 = vadd.f32 %v404_v27, %v403_v26 }
 0x145   :  { %v406_v33 = vrot.slane %v405_v30, 1 }
 0x147   :  { %v407_v35 = vadd.f32 %v406_v33, %v405_v30 }
 0x191   :  { %v631_v39 = vpop.permute.xlu0 %630 }
 0x192   :  { %v633_v40 = vunpack.i.h.bf16 %v631_v39  ;;  %v632_v41 = vunpack.i.l.bf16 %v631_v39  ;;  %v653_v39 = vpop.eup %652 }
 0x194   :  { %v316_v42 = vsel %vm262_vm2, %v856_v24, %v632_v41 }
 0x195   :  { %v618_v43 = vpack.c.bf16 %v633_v40, %v316_v42 }
 0x197   :  { %620 = vmatpush3.bf16.msk.msra.mxu1 %vm619_vm5, %v618_v43 }
 0x19a   :  { %551 = vmatmul.mubr.msk.f32.vlgmr.msra.gmra.mrb[2].mxu1 %vm318_vm6, %v307_v37 }
 0x1cb   :  { %v420_v4 = vpop.xlane.xlu0 %419 }
 0x1cc   :  { %v423_v6 = vsub.f32 %v422_v5, %v420_v4 }
 0x26d   :  { %v868_v44 = vpop.f32.mrb[2].mxu1 }
 0x26e   :  { %v552_v45 = vpop.f32.mrb[3].mxu1  ;;  %v424_v46 = vmul.f32 2.0, %v868_v44  ;;  %v421_v24 = vsub.f32 %v407_v35, %v868_v44 }
 0x270   :  { %426 = vrot.lane.b32.xlu1 %v424_v46, %s659_s3 }
 0x274   :  { %256 = vrot.lane.b32.xlu1 %v637_v34, %s657_s0  ;;  %v436_v34 = vshrl.u32 %v435_v32, 7 }
 0x276   :  { %v437_v36 = vsub.s32 0, %v436_v34 }
 0x2e2   :  { %v427_v7 = vpop.permute.xlu1 %426 }
 0x2e3   :  { %v429_v8 = vadd.f32 %v427_v7, %v423_v6 }
 0x2e5   :  { %431 = vrot.lane.b32.xlu1 %v429_v8, %s657_s0 }
 0x2e6   :  { %v257_v10 = vpop.permute.xlu1 %256 }
 0x2e7   :  { %v263_v11 = vsel %vm262_vm2, %v643_v9, %v257_v10 }
 0x2e8   :  { %266 = vst.msk [vmem:[%s901_s4] sm:$0xff] %vm265_vm7, %v263_v11 }
 0x2e9   :  { %258 = vrot.lane.b32.xlu1 %v645_v12, %s657_s0 }
 0x357   :  { %v432_v37 = vpop.permute.xlu1 %431 }
 0x358   :  { %v434_v29 = vsel %vm262_vm2, %v421_v24, %v432_v37 }
 0x359   :  { %v438_v38 = vrot.slane %v434_v29, %v437_v36 }
 0x35b   :  { %439 = vst.msk [vmem:[%s902_s5] sm:$0xff] %vm265_vm7, %v438_v38  ;;  %v259_v40 = vpop.permute.xlu1 %258 }
 0x35c   :  { %v264_v41 = vsel %vm262_vm2, %v653_v39, %v259_v40 }
 0x35d   :  { %267 = vst.msk [vmem:[%s901_s4 + $0x8] sm:$0xff] %vm265_vm7, %v264_v41 }

</bundles_post_ra>
